<compile_context>
chip_gen: v5e
topology: v5e:2x2
jax: 0.10.0
libtpu: 0.0.40
codegen_flags: <defaults>
</compile_context>

<pallas_src>
import math

import jax
import jax.numpy as jnp
from jax.experimental import pallas as pl
from jax.experimental.pallas import tpu as pltpu


def _pick_tile(total, cap, align):
    """Largest tile <= cap that divides `total` and is a multiple of `align`.
    Falls back to the full extent when no such divisor exists (keeps the
    (8,128) BlockSpec rule satisfied either way)."""
    if total <= cap:
        return total
    t = (cap // align) * align
    while t >= align:
        if total % t == 0:
            return t
        t -= align
    return total


# ---------------------------------------------------------------------------
# conv1x1 (channel->channel) path: lane axis = H*W, no transposes, no padding
# ---------------------------------------------------------------------------
def _conv1x1_kernel(x_ref, w_ref, b_ref, o_ref):
    # x_ref: (1, Cin, THW)  w_ref: (Cout, Cin)  b_ref: (Cout, 1)  o_ref: (1, Cout, THW)
    y = jnp.dot(w_ref[...], x_ref[0], preferred_element_type=jnp.float32)
    o_ref[0] = (y + b_ref[...]).astype(o_ref.dtype)


def _conv1x1(x, w, b, *, hw_tile_cap=2048):
    """x: (N, Cin, H, W) NCHW;  w: (Cout, Cin);  b: (Cout,).  Returns NCHW."""
    n, cin, h, wd = x.shape
    cout = w.shape[0]
    hw = h * wd
    x3 = x.reshape(n, cin, hw)                 # free reshape (contiguous), no transpose
    thw = _pick_tile(hw, hw_tile_cap, 128)
    grid = (n, hw // thw)

    out = pl.pallas_call(
        _conv1x1_kernel,
        out_shape=jax.ShapeDtypeStruct((n, cout, hw), x.dtype),
        grid_spec=pltpu.PrefetchScalarGridSpec(
            num_scalar_prefetch=0,
            grid=grid,
            in_specs=[
                pl.BlockSpec((1, cin, thw), lambda i, j: (i, 0, j)),
                pl.BlockSpec((cout, cin), lambda i, j: (0, 0)),
                pl.BlockSpec((cout, 1), lambda i, j: (0, 0)),
            ],
            out_specs=pl.BlockSpec((1, cout, thw), lambda i, j: (i, 0, j)),
        ),
        compiler_params=pltpu.CompilerParams(
            dimension_semantics=("parallel", "parallel")),
    )(x3, w, b.reshape(cout, 1))
    return out.reshape(n, cout, h, wd)         # free reshape back to NCHW


# ---------------------------------------------------------------------------
# flatten (Linear) path: K-tiled matmul + bias with fp32 accumulator
# ---------------------------------------------------------------------------
def _linear_kernel(x_ref, wt_ref, b_ref, o_ref, acc_ref):
    k = pl.program_id(0)

    @pl.when(k == 0)
    def _():
        acc_ref[...] = jnp.zeros_like(acc_ref)

    acc_ref[...] += jnp.dot(x_ref[...], wt_ref[...],
                            preferred_element_type=jnp.float32)

    @pl.when(k == pl.num_programs(0) - 1)
    def _():
        o_ref[...] = (acc_ref[...] + b_ref[...]).astype(o_ref.dtype)


def _linear(x2d, wt, b, *, k_tile_cap=2048):
    """y = x2d @ wt + b.   x2d: (M, K)   wt: (K, Cout)   b: (Cout,)."""
    m, k = x2d.shape
    cout = wt.shape[1]
    tk = _pick_tile(k, k_tile_cap, 128)
    grid = (k // tk,)

    return pl.pallas_call(
        _linear_kernel,
        out_shape=jax.ShapeDtypeStruct((m, cout), x2d.dtype),
        grid_spec=pltpu.PrefetchScalarGridSpec(
            num_scalar_prefetch=0,
            grid=grid,
            in_specs=[
                pl.BlockSpec((m, tk), lambda kk: (0, kk)),
                pl.BlockSpec((tk, cout), lambda kk: (kk, 0)),
                pl.BlockSpec((1, cout), lambda kk: (0, 0)),
            ],
            out_specs=pl.BlockSpec((m, cout), lambda kk: (0, 0)),
            scratch_shapes=[pltpu.VMEM((m, cout), jnp.float32)],
        ),
        compiler_params=pltpu.CompilerParams(
            dimension_semantics=("arbitrary",)),
    )(x2d, wt, b.reshape(1, cout))


# ---------------------------------------------------------------------------
# Module wrapper
# ---------------------------------------------------------------------------
class TransformPallas:
    """JAX/Pallas port of Transform (conv1x1 and flatten/linear paths)."""

    def __init__(self, in_shape, out_shape, key, flatten=False, mask=None):
        self.in_shape = tuple(in_shape)
        self.out_shape = tuple(out_shape)
        self.flatten = flatten
        if flatten:
            fan_in = int(math.prod(in_shape))
            fan_out = int(math.prod(out_shape))
        else:
            fan_in = in_shape[0]
            fan_out = out_shape[0]
        self.shape = [fan_in, fan_out]

        kw, kb = jax.random.split(key)
        # Matches PyTorch's U(-1/sqrt(fan_in), 1/sqrt(fan_in)) scheme.
        bound = 1.0 / math.sqrt(float(fan_in))
        # weight stored PyTorch-style: (out_features, in_features)
        self.weight = jax.random.uniform(
            kw, (fan_out, fan_in), jnp.float32, -bound, bound)
        self.bias = jax.random.uniform(
            kb, (fan_out,), jnp.float32, -bound, bound)
        self.mask = mask  # optional pruning mask, same shape as (fan_out, fan_in)

        # Fold mask once (not per-call) and cache the transposed weight for the
        # Linear path so no per-forward XLA passes over the weight are needed.
        # TODO(synk): prune.custom_from_mask's weight_orig/weight_mask
        # re-parameterization is modeled only as this one-time weight*mask fold.
        w_eff = self.weight if mask is None else self.weight * mask.reshape(self.weight.shape)
        self._w_eff = w_eff            # (fan_out, fan_in)  -> conv1x1 weight
        self._w_eff_t = w_eff.T        # (fan_in, fan_out)  -> Linear (K, Cout)

    def __call__(self, x):
        if self.flatten:
            n = x.shape[0]
            y2d = _linear(x.reshape(n, -1), self._w_eff_t, self.bias)
            return y2d.reshape((n, *self.out_shape))
        else:
            assert x.shape[1] == self.in_shape[0]
            return _conv1x1(x, self._w_eff, self.bias)


def _reference(x, module):
    """Plain-JAX reference of the same forward for a sanity check."""
    w = module._w_eff
    if module.flatten:
        n = x.shape[0]
        y = x.reshape(n, -1) @ w.T + module.bias
        return y.reshape((n, *module.out_shape))
    else:
        y = jnp.einsum("nchw,oc->nohw", x, w) + module.bias[None, :, None, None]
        return y


if __name__ == "__main__":
    key = jax.random.PRNGKey(0)
    k_x, k_p, k_p2 = jax.random.split(key, 3)

    # --- conv1x1 (default) path: in_shape=(4,16,16) -> out_shape=(6,16,16) ---
    in_shape = (4, 16, 16)
    out_shape = (6, 16, 16)
    x = jax.random.normal(k_x, (2, *in_shape), jnp.float32)  # NCHW

    mod = TransformPallas(in_shape, out_shape, k_p, flatten=False)
    y = jax.block_until_ready(mod(x))
    y_ref = _reference(x, mod)
    assert y.shape == (2, *out_shape), y.shape
    assert jnp.allclose(y, y_ref, atol=1e-4, rtol=1e-4)

    # --- flatten (Linear) path: prod(in_shape)=1024 -> prod(out_shape)=32 ---
    out_shape_f = (2, 4, 4)
    mod_f = TransformPallas(in_shape, out_shape_f, k_p2, flatten=True)
    y_f = jax.block_until_ready(mod_f(x))
    y_f_ref = _reference(x, mod_f)
    assert y_f.shape == (2, *out_shape_f), y_f.shape
    assert jnp.allclose(y_f, y_f_ref, atol=1e-3, rtol=1e-3)

    print("KERNEL_OK")
</pallas_src>

<mosaic_0001>
module attributes {stable_mosaic.version = 11 : i64} {
  func.func @_conv1x1_kernel(%arg0: i32, %arg1: i32, %arg2: memref<1x4x256xf32, #tpu.memory_space<vmem>>, %arg3: memref<6x4xf32, #tpu.memory_space<vmem>>, %arg4: memref<6x1xf32, #tpu.memory_space<vmem>>, %arg5: memref<1x6x256xf32, #tpu.memory_space<vmem>>) attributes {dimension_semantics = [#tpu.dimension_semantics<parallel>, #tpu.dimension_semantics<parallel>], iteration_bounds = array<i64: 2, 1>, scalar_prefetch = 0 : i64, scratch_operands = 0 : i64, tpu.core_type = #tpu.core_type<tc>, window_params = [{transform_indices = @transform_0, window_bounds = array<i64: 1, 4, 256>}, {pipeline_mode = #tpu.pipeline_mode<synchronous>, transform_indices = @transform_1, window_bounds = array<i64: 6, 4>}, {pipeline_mode = #tpu.pipeline_mode<synchronous>, transform_indices = @transform_2, window_bounds = array<i64: 6, 1>}, {transform_indices = @transform_3, window_bounds = array<i64: 1, 6, 256>}]} {
    %c0 = arith.constant 0 : index
    %c0_0 = arith.constant 0 : index
    %0 = vector.load %arg3[%c0, %c0_0] : memref<6x4xf32, #tpu.memory_space<vmem>>, vector<6x4xf32>
    %c0_1 = arith.constant 0 : index
    %c0_2 = arith.constant 0 : index
    %c0_3 = arith.constant 0 : index
    %1 = vector.load %arg2[%c0_1, %c0_2, %c0_3] : memref<1x4x256xf32, #tpu.memory_space<vmem>>, vector<1x4x256xf32>
    %2 = vector.shape_cast %1 : vector<1x4x256xf32> to vector<4x256xf32>
    %cst = arith.constant dense<0.000000e+00> : vector<6x256xf32>
    %3 = tpu.matmul %0, %2, %cst {dimension_numbers = #tpu.dot_dimension_numbers<[1], [0], [0], [1], [0, 0, 1, 1], [], []>} : vector<6x4xf32>, vector<4x256xf32>, vector<6x256xf32> -> vector<6x256xf32>
    %c0_4 = arith.constant 0 : index
    %c0_5 = arith.constant 0 : index
    %4 = vector.load %arg4[%c0_4, %c0_5] : memref<6x1xf32, #tpu.memory_space<vmem>>, vector<6x1xf32>
    %5 = vector.broadcast %4 : vector<6x1xf32> to vector<6x256xf32>
    %6 = arith.addf %3, %5 : vector<6x256xf32>
    %c0_6 = arith.constant 0 : index
    %c0_7 = arith.constant 0 : index
    %c0_8 = arith.constant 0 : index
    %7 = vector.load %arg5[%c0_6, %c0_7, %c0_8] : memref<1x6x256xf32, #tpu.memory_space<vmem>>, vector<1x6x256xf32>
    %8 = vector.shape_cast %7 : vector<1x6x256xf32> to vector<6x256xf32>
    %9 = vector.shape_cast %6 : vector<6x256xf32> to vector<1x6x256xf32>
    tpu.vector_store %arg5[%c0_6, %c0_7, %c0_8], %9 {strides = array<i32>} : memref<1x6x256xf32, #tpu.memory_space<vmem>>, vector<1x6x256xf32>,
    return
  }
  func.func @transform_0(%arg0: i32, %arg1: i32) -> (i32, i32, i32) {
    %c0_i32 = arith.constant 0 : i32
    %c0_i32_0 = arith.constant 0 : i32
    return %arg0, %c0_i32, %arg1 : i32, i32, i32
  }
  func.func @transform_1(%arg0: i32, %arg1: i32) -> (i32, i32) {
    %c0_i32 = arith.constant 0 : i32
    %c0_i32_0 = arith.constant 0 : i32
    %c0_i32_1 = arith.constant 0 : i32
    return %c0_i32, %c0_i32_0 : i32, i32
  }
  func.func @transform_2(%arg0: i32, %arg1: i32) -> (i32, i32) {
    %c0_i32 = arith.constant 0 : i32
    %c0_i32_0 = arith.constant 0 : i32
    %c0_i32_1 = arith.constant 0 : i32
    return %c0_i32, %c0_i32_0 : i32, i32
  }
  func.func @transform_3(%arg0: i32, %arg1: i32) -> (i32, i32, i32) {
    %c0_i32 = arith.constant 0 : i32
    %c0_i32_0 = arith.constant 0 : i32
    return %arg0, %c0_i32, %arg1 : i32, i32, i32
  }
}

</mosaic_0001>

<bundles_post_ra>
// kernel: tpu_custom_call.1
= control target key start
LH: loop header
LB: loop body
LE: loop exit
PB: predicated region body
PF: predicated region fallthrough
CT: control target
= control target key end

     0   :  { %s448_s12 = smov 0   ;;  %s450_s13 = smov 0   ;;  %s487_s0 = inlined_call_operand.vmem [shape: f32[2,4,256], index: 0, kind: input, shape index: {}]   ;;  %s488_s1 = inlined_call_operand.vmem [shape: f32[6,4], index: 1, kind: input, shape index: {}]   ;;  %s489_s2 = inlined_call_operand.vmem [shape: f32[6,1], index: 2, kind: input, shape index: {}]   ;;  %s490_s3 = inlined_call_operand.vmem [shape: f32[2,6,256], index: 3, kind: output, shape index: {}]  }
   0x1   :  { %s452_s14 = smov 0  }
   0x2 LB: > { %s25_s15 = sadd.s32 1, %s421_s13  ;;  %p364_p0 = scmp.ge.s32.totalorder %s425_s14, 1  ;;  %s425_s14 = sphi %s452_s14, %s13_s14   ;;  %s421_s13 = sphi %s450_s13, %s492_s13   ;;  %s417_s12 = sphi %s448_s12, %s491_s12  }
   0x3   : > { %p27_p1 = scmp.ge.s32.totalorder %s25_s15, 2  ;;  %p158_p2 = scmp.lt.s32.totalorder %s425_s14, 3 }
   0x5   : > { %s494_s15 = smov (%p27_p1, %s25_s15), 0  ;;  %p159_p3 = pnand %p364_p0, %p158_p2 }
   0x6   : > { %p191_p4 = scmp.lt.s32.totalorder (!%p159_p3), %s417_s12, 1 }
   0x7   : > { %162 = sbr.rel (%p159_p3) target bundleno = 155 (0x9b), region = 32 }
   0xc   : > { %v427_v0 = vmov 0   ;;  %v212_v1 = vld [vmem:[%s489_s2] sm:$0x3f]  ;;  %s496_s12 = smov (!%p191_p4, %s417_s12), 1  ;;  %vm226_vm0 = vcmask 1043456   ;;  %vm222_vm1 = vcmask 31744  }
   0xd   : > { %402 = vset.pattern.permute.xlu0 %v427_v0  ;;  %s375_s18 = sshll.u32 %s496_s12, 3  ;;  %v210_v3 = vld [vmem:[%s488_s1] sm:$0x3f]  ;;  %s376_s24 = sshll.u32 %s496_s12, 4 }
   0xe   : > { %215 = vperm.xlu0 %402, %v212_v1   ;;  %s198_s21 = scalar_lea.vmem %s487_s0, %s375_s18  ;;  %s208_s27 = scalar_lea.vmem %s490_s3, %s376_s24 }
   0xf   : > { %v211_v2 = vld [vmem:[%s198_s21] sm:$0xff] }
  0x10   : > { %219 = vst [vmem:[#allocation1] ss:$2 sm:$0xff] %v211_v2 }
  0x17   : > { %v220_v4 = vld.sshfl [vmem:[#allocation1] sm:$0xff pattern:$0x75316420]  ;;  %v221_v5 = vld.sshfl [vmem:[#allocation1 + $0x8] sm:$0xff pattern:$0x75316420] }
  0x18   : > { %369 = vmatpush.msk.msra.mxu0 %vm226_vm0, %v220_v4  ;;  %371 = vmatpush.msk.msra.mxu1 %vm226_vm0, %v221_v5 }
  0x19   : > { %370 = vmatmul.msk.f32.vlgmr.msra.gmra.mxu0 %vm222_vm1, %v210_v3  ;;  %372 = vmatmul.msk.f32.vlgmr.msra.gmra.mxu1 %vm222_vm1, %v210_v3 }
  0x80   : > { %v216_v6 = vpop.permute.xlu0 %215 }
  0x96   : > { %v248_v7 = vpop.f32.mrf.mxu0  ;;  %v268_v8 = vpop.f32.mrf.mxu1 }
  0x97   : > { %v249_v9 = vadd.f32 %v248_v7, %v216_v6  ;;  %v269_v10 = vadd.f32 %v268_v8, %v216_v6 }
  0x99   : > { %271 = vst [vmem:[%s208_s27] sm:$0x3f] %v249_v9 }
  0x9a   : > { %272 = vst [vmem:[%s208_s27 + $0x8] sm:$0x3f] %v269_v10 }
  0x9b PF: > { %s13_s14 = sadd.s32 1, %s425_s14   ;;  %s491_s12 = smov %s421_s13 }
  0x9c   : > { %p10_p5 = scmp.ge.s32.totalorder %s13_s14, 4   ;;  %s492_s13 = smov %s494_s15 }
  0x9e   :  { %12 = sbr.rel (!%p10_p5) target bundleno = 2 (0x2), region = 62 }

</bundles_post_ra>
